<compile_context>
chip_gen: v7x
topology: tpu7x:2x2x1
jax: 0.10.0
libtpu: 0.0.40
codegen_flags: <defaults>
</compile_context>

<pallas_src>
import jax
import jax.numpy as jnp
from jax.experimental import pallas as pl
from jax.experimental.pallas import tpu as pltpu


def _mult_attn_kernel(enc_ref, v_ref, ctx_ref, attn_ref):
    enc = enc_ref[...]                       # (bb, S, D)
    v = v_ref[...]                           # (bb, 1, D) = W^T h  (enc dtype)

    # Score row, lane-dense in S.  enc is the dot_general LHS (MXU-natural:
    # D in lanes); only the small (S, 1) score vector gets transposed to (1, S).
    s = jnp.einsum("bsd,bud->bus", enc, v,
                   preferred_element_type=jnp.float32)          # (bb, 1, S)

    # Softmax over the sequence (lane) axis in f32; exact division so the
    # stored attention weights track the reference.
    m = jnp.max(s, axis=-1, keepdims=True)
    e = jnp.exp(s - m)
    w = e / jnp.sum(e, axis=-1, keepdims=True)                  # (bb, 1, S)

    # Context = attention-weighted sum over S as a (1,S) @ (S,D) MXU matmul;
    # enc is reused from the same VMEM tile (single HBM read).
    ctx = jnp.einsum("bus,bsd->bud", w.astype(enc.dtype), enc,
                     preferred_element_type=jnp.float32)        # (bb, 1, D)

    ctx_ref[...] = ctx.astype(ctx_ref.dtype)
    attn_ref[...] = w.astype(attn_ref.dtype)


def multiplicative_attention_general(encoder_outputs, prev_hidden_state,
                                     w_general, b_general=None, *, block_b=None):
    """encoder_outputs: (B, S, D); prev_hidden_state: (L, B, H) with L*H == D.

    w_general: nn.Linear weight, shape (out=D, in=D). b_general is accepted for
    signature parity but mathematically irrelevant (constant-per-row shift under
    softmax), so it never reaches the kernel.
    Returns (context (B, D), attention_weights (B, S, 1)).
    """
    B, S, D = encoder_outputs.shape
    dt = encoder_outputs.dtype
    del b_general  # softmax shift-invariance: (b_g . h) cancels exactly.

    # torch glue: permute(1, 0, 2) + view(B, -1)
    h_flat = jnp.transpose(prev_hidden_state, (1, 0, 2)).reshape(B, -1)   # (B, D)

    # Algebraic collapse of 'general' scoring:
    #   Score[b, s] = (enc[b, s] @ W^T + b_g) . h[b] = enc[b, s] . (W^T h[b]) + const
    # v is tiny and computed once here (fused by XLA); the kernel never sees W.
    v = (h_flat @ w_general).astype(dt).reshape(B, 1, D)                  # (B, 1, D)

    # Batch-block size: as many rows as fit a ~8 MiB enc tile (16 MiB when
    # double-buffered, well under the explicit 48 MiB scoped-VMEM limit below).
    if block_b is None:
        itemsize = jnp.dtype(dt).itemsize
        per_batch = max(1, S * D * itemsize)
        budget = 8 * 1024 * 1024
        nb = max(1, budget // per_batch)
        if B >= 16:
            # Keep >= 2 grid steps so the "parallel" batch axis can split across
            # v7x's two TensorCores (costs only ~0.35us extra on v5e/v6e).
            nb = min(nb, pl.cdiv(B, 2))
        block_b = min(B, nb)

    grid_b = pl.cdiv(B, block_b)   # ragged last block: OOB reads are garbage
                                   # rows whose OOB writes are dropped; every
                                   # batch row is computed independently.

    ctx3, attn3 = pl.pallas_call(
        _mult_attn_kernel,
        out_shape=(
            jax.ShapeDtypeStruct((B, 1, D), dt),   # context (lane-dense in D)
            jax.ShapeDtypeStruct((B, 1, S), dt),   # attention (lane-dense in S)
        ),
        grid_spec=pltpu.PrefetchScalarGridSpec(
            num_scalar_prefetch=0,
            grid=(grid_b,),
            in_specs=[
                pl.BlockSpec((block_b, S, D), lambda b: (b, 0, 0)),  # encoder_outputs
                pl.BlockSpec((block_b, 1, D), lambda b: (b, 0, 0)),  # v = W^T h
            ],
            out_specs=[
                pl.BlockSpec((block_b, 1, D), lambda b: (b, 0, 0)),
                pl.BlockSpec((block_b, 1, S), lambda b: (b, 0, 0)),
            ],
        ),
        compiler_params=pltpu.CompilerParams(
            dimension_semantics=("parallel",),
            vmem_limit_bytes=48 * 1024 * 1024,
        ),
    )(encoder_outputs, v)

    context = ctx3.reshape(B, D)
    attn = attn3.reshape(B, S, 1)   # back to the PyTorch layout (wrapper-side)
    return context, attn


def _reference(encoder_outputs, prev_hidden_state, w_general, b_general):
    """Pure-JAX reference of the original (uncollapsed) torch forward."""
    B, S, D = encoder_outputs.shape
    h = jnp.transpose(prev_hidden_state, (1, 0, 2)).reshape(B, -1)         # (B, D)
    proj = encoder_outputs @ w_general.T + b_general                        # (B, S, D)
    score = jnp.einsum("bsd,bd->bs", proj, h)[..., None]                    # (B, S, 1)
    attn = jax.nn.softmax(score, axis=1)
    ctx = jnp.sum(attn * encoder_outputs, axis=1)
    return ctx, attn


if __name__ == "__main__":
    batch, seq, hidden = 2, 8, 32   # bidirectional=False -> input_dim = hidden
    key = jax.random.PRNGKey(0)
    k1, k2, k3, k4 = jax.random.split(key, 4)

    encoder_outputs = jax.random.normal(k1, (batch, seq, hidden), dtype=jnp.float32)
    prev_hidden_state = jax.random.normal(k2, (1, batch, hidden), dtype=jnp.float32)

    # Deterministic nn.Linear-style params for self.general: W (out, in), b (out,)
    bound = 1.0 / (hidden ** 0.5)
    w_general = jax.random.uniform(k3, (hidden, hidden), jnp.float32, -bound, bound)
    b_general = jax.random.uniform(k4, (hidden,), jnp.float32, -bound, bound)

    context, attn_weights = multiplicative_attention_general(
        encoder_outputs, prev_hidden_state, w_general, b_general)
    jax.block_until_ready((context, attn_weights))

    ref_ctx, ref_attn = _reference(encoder_outputs, prev_hidden_state,
                                   w_general, b_general)
    assert context.shape == (batch, hidden)
    assert attn_weights.shape == (batch, seq, 1)
    # The reference includes the bias term; agreement here also confirms the
    # bias really is a softmax-invariant no-op.  Tolerance covers the f32
    # re-association of the algebraic score rewrite and MXU f32 accumulation.
    assert jnp.allclose(context, ref_ctx, atol=1e-3, rtol=1e-3)
    assert jnp.allclose(attn_weights, ref_attn, atol=1e-3, rtol=1e-3)

    print("KERNEL_OK")
</pallas_src>

<mosaic_0001>
module attributes {stable_mosaic.version = 11 : i64} {
  func.func @_mult_attn_kernel(%arg0: i32, %arg1: memref<2x8x32xf32, #tpu.memory_space<vmem>>, %arg2: memref<2x1x32xf32, #tpu.memory_space<vmem>>, %arg3: memref<2x1x32xf32, #tpu.memory_space<vmem>>, %arg4: memref<2x1x8xf32, #tpu.memory_space<vmem>>) attributes {dimension_semantics = [#tpu.dimension_semantics<parallel>], iteration_bounds = array<i64: 1>, scalar_prefetch = 0 : i64, scratch_operands = 0 : i64, tpu.core_type = #tpu.core_type<tc>, window_params = [{transform_indices = @transform_0, window_bounds = array<i64: 2, 8, 32>}, {transform_indices = @transform_1, window_bounds = array<i64: 2, 1, 32>}, {transform_indices = @transform_2, window_bounds = array<i64: 2, 1, 32>}, {transform_indices = @transform_3, window_bounds = array<i64: 2, 1, 8>}]} {
    %c0 = arith.constant 0 : index
    %c0_0 = arith.constant 0 : index
    %c0_1 = arith.constant 0 : index
    %0 = vector.load %arg1[%c0, %c0_0, %c0_1] : memref<2x8x32xf32, #tpu.memory_space<vmem>>, vector<2x8x32xf32>
    %c0_2 = arith.constant 0 : index
    %c0_3 = arith.constant 0 : index
    %c0_4 = arith.constant 0 : index
    %1 = vector.load %arg2[%c0_2, %c0_3, %c0_4] : memref<2x1x32xf32, #tpu.memory_space<vmem>>, vector<2x1x32xf32>
    "tpu.trace_start"() <{level = 10 : i32, message = "bsd,bud->bus"}> : () -> ()
    %cst = arith.constant dense<0.000000e+00> : vector<2x1x8xf32>
    %2 = tpu.matmul %1, %0, %cst {dimension_numbers = #tpu.dot_dimension_numbers<[2], [2], [1], [1], [0, 0, 0, 1, 1, 1], [0], [0]>} : vector<2x1x32xf32>, vector<2x8x32xf32>, vector<2x1x8xf32> -> vector<2x1x8xf32>
    "tpu.trace_stop"() : () -> ()
    %cst_5 = arith.constant dense<0xFF800000> : vector<2x1xf32>
    %3 = vector.multi_reduction <maximumf>, %2, %cst_5 [2] : vector<2x1x8xf32> to vector<2x1xf32>
    %4 = vector.shape_cast %3 : vector<2x1xf32> to vector<2x1x1xf32>
    %5 = vector.broadcast %4 : vector<2x1x1xf32> to vector<2x1x8xf32>
    %6 = arith.subf %2, %5 : vector<2x1x8xf32>
    %7 = math.exp %6 : vector<2x1x8xf32>
    %cst_6 = arith.constant dense<0.000000e+00> : vector<2x1xf32>
    %8 = vector.multi_reduction <add>, %7, %cst_6 [2] : vector<2x1x8xf32> to vector<2x1xf32>
    %9 = vector.shape_cast %8 : vector<2x1xf32> to vector<2x1x1xf32>
    %10 = vector.broadcast %9 : vector<2x1x1xf32> to vector<2x1x8xf32>
    %11 = arith.divf %7, %10 : vector<2x1x8xf32>
    "tpu.trace_start"() <{level = 10 : i32, message = "bus,bsd->bud"}> : () -> ()
    %cst_7 = arith.constant dense<0.000000e+00> : vector<2x1x32xf32>
    %12 = tpu.matmul %11, %0, %cst_7 {dimension_numbers = #tpu.dot_dimension_numbers<[2], [1], [1], [2], [0, 0, 0, 1, 1, 2], [0], [0]>} : vector<2x1x8xf32>, vector<2x8x32xf32>, vector<2x1x32xf32> -> vector<2x1x32xf32>
    "tpu.trace_stop"() : () -> ()
    %c0_8 = arith.constant 0 : index
    %c0_9 = arith.constant 0 : index
    %c0_10 = arith.constant 0 : index
    %13 = vector.load %arg3[%c0_8, %c0_9, %c0_10] : memref<2x1x32xf32, #tpu.memory_space<vmem>>, vector<2x1x32xf32>
    tpu.vector_store %arg3[%c0_8, %c0_9, %c0_10], %12 {strides = array<i32>} : memref<2x1x32xf32, #tpu.memory_space<vmem>>, vector<2x1x32xf32>,
    %c0_11 = arith.constant 0 : index
    %c0_12 = arith.constant 0 : index
    %c0_13 = arith.constant 0 : index
    %14 = vector.load %arg4[%c0_11, %c0_12, %c0_13] : memref<2x1x8xf32, #tpu.memory_space<vmem>>, vector<2x1x8xf32>
    tpu.vector_store %arg4[%c0_11, %c0_12, %c0_13], %11 {strides = array<i32>} : memref<2x1x8xf32, #tpu.memory_space<vmem>>, vector<2x1x8xf32>,
    return
  }
  func.func @transform_0(%arg0: i32) -> (i32, i32, i32) {
    %c0_i32 = arith.constant 0 : i32
    %c0_i32_0 = arith.constant 0 : i32
    %c0_i32_1 = arith.constant 0 : i32
    return %arg0, %c0_i32, %c0_i32_0 : i32, i32, i32
  }
  func.func @transform_1(%arg0: i32) -> (i32, i32, i32) {
    %c0_i32 = arith.constant 0 : i32
    %c0_i32_0 = arith.constant 0 : i32
    %c0_i32_1 = arith.constant 0 : i32
    return %arg0, %c0_i32, %c0_i32_0 : i32, i32, i32
  }
  func.func @transform_2(%arg0: i32) -> (i32, i32, i32) {
    %c0_i32 = arith.constant 0 : i32
    %c0_i32_0 = arith.constant 0 : i32
    %c0_i32_1 = arith.constant 0 : i32
    return %arg0, %c0_i32, %c0_i32_0 : i32, i32, i32
  }
  func.func @transform_3(%arg0: i32) -> (i32, i32, i32) {
    %c0_i32 = arith.constant 0 : i32
    %c0_i32_0 = arith.constant 0 : i32
    %c0_i32_1 = arith.constant 0 : i32
    return %arg0, %c0_i32, %c0_i32_0 : i32, i32, i32
  }
}

</mosaic_0001>

<bundles_post_ra>
// kernel: tpu_custom_call.1
= control target key start
LH: loop header
LB: loop body
LE: loop exit
PB: predicated region body
PF: predicated region fallthrough
CT: control target
= control target key end

     0   :  { %9 = vsyncpa [#allocation3], 0  ;;  %s598_s0 = inlined_call_operand.hbm [shape: f32[2,8,32], index: 0, kind: input, shape index: {}]   ;;  %s599_s1 = inlined_call_operand.vmem [shape: f32[2,1,32], index: 1, kind: input, shape index: {}]   ;;  %s600_s2 = inlined_call_operand.hbm [shape: f32[2,1,32], index: 2, kind: output, shape index: {0}]   ;;  %s601_s3 = inlined_call_operand.hbm [shape: f32[2,1,8], index: 3, kind: output, shape index: {1}]  }
   0x1   :  { %10 = vsyncpa [#allocation4], 0 }
   0x2   :  { %11 = vsyncpa [#allocation7], 0  ;;  %s517_s12 = smov [#allocation2]   ;;  %s445_s16 = scalar_lea.hbm %s598_s0, 256 }
   0x3   :  { %s17_s13 = sshll.u32 %s517_s12, 4  ;;  %p446_p0 = scmp.ne.s32.totalorder %s598_s0, %s445_s16  ;;  %s18_s13 = int_to_ptr.vmem [resolvable:$true] %s17_s13 }
   0x4   :  { %p449_p1 = scmp.lt.u32.totalorder %s445_s16, %s598_s0 }
   0x6   :  { %p451_p2 = pnand %p449_p1, %p446_p0 }
   0x8   :  { %454 = shalt.err (!%p451_p2)
}
   0x9   :  { %s455_s21 = scalar_lea.vmem %s18_s13, 256  ;;  %p460_p4 = scmp.lt.s32.totalorder %s18_s13, %s18_s13 }
   0xa   :  { %p456_p3 = scmp.ne.s32.totalorder %s18_s13, %s455_s21  ;;  %p461_p5 = scmp.lt.s32.totalorder %s455_s21, %s455_s21 }
   0xc   :  { %p462_p6 = por %p461_p5, %p460_p4 }
   0xe   :  { %p463_p7 = pnand %p462_p6, %p456_p3 }
  0x10   :  { %466 = shalt.err (!%p463_p7)
}
  0x11   :  { %s518_s22 = smov 128   ;;  %s519_s23 = smov 8  }
  0x12   :  { %23 = dma.hbm_to_vmem [thread:$0]  %s598_s0, 256, %s18_s13, [#allocation3], %s518_s22, %s518_s22, %s519_s23  }
  0x13   :  { %511 = dma.done.wait [#allocation3], 256  }
  0x14   :  { %512 = vsyncadd [#allocation3], 4294967040  ;;  %v520_v0 = vmov 0.0   ;;  %vm521_vm0 = vmmov 0   ;;  %vm33_vm1 = vcmask 261120   ;;  %v29_v1 = vld [vmem:[#allocation2] sm:$0xff] }
  0x15   :  { %408 = vmatprep.subr.mxu0 %v520_v0  ;;  %410 = vmatprep.mubr.msk.f32.mxu0 %vm521_vm0, %v520_v0  ;;  %v30_v2 = vld [vmem:[#allocation2 + $0x8] sm:$0xff]  ;;  %v31_v3 = vld [vmem:[%s599_s1] sm:$0x1]  ;;  %v32_v4 = vld [vmem:[%s599_s1 + $0x1] sm:$0x1]  ;;  %vm186_vm2 = vcmask 57344  }
  0x16   :  { %413 = vmatprep.subr.mxu1 %v520_v0  ;;  %415 = vmatprep.mubr.msk.f32.mxu1 %vm521_vm0, %v520_v0  ;;  %vm209_vm3 = vcmask 64512   ;;  %s522_s1 = smov [#allocation6]  }
  0x17   :  { %409 = vmatpush3.xpose.msk.msra.mxu0 %vm33_vm1, %v29_v1  ;;  %414 = vmatpush3.xpose.msk.msra.mxu1 %vm33_vm1, %v30_v2  ;;  %s378_s29 = sshll.u32 %s522_s1, 4  ;;  %s379_s29 = int_to_ptr.vmem [resolvable:$true] %s378_s29 }
  0x18   :  { %418 = vmatprep.subr.mxu0 %v520_v0  ;;  %423 = vmatprep.subr.mxu1 %v520_v0  ;;  %s467_s30 = scalar_lea.vmem %s379_s29, 32  ;;  %p472_p9 = scmp.lt.s32.totalorder %s379_s29, %s379_s29 }
  0x19   :  { %p468_p8 = scmp.ne.s32.totalorder %s379_s29, %s467_s30  ;;  %p473_p10 = scmp.lt.s32.totalorder %s467_s30, %s467_s30 }
  0x1a   :  { %411 = vmatmul.mubr.msk.f32.vlgmr.msra.gmra.mrb[0].mxu0 %vm33_vm1, %v31_v3  ;;  %416 = vmatmul.mubr.msk.f32.vlgmr.msra.gmra.mrb[0].mxu1 %vm33_vm1, %v32_v4 }
  0x1b   :  { %419 = vmatpush3.msra.mxu0 %v29_v1  ;;  %420 = vmatprep.mubr.msk.f32.mxu0 %vm521_vm0, %v520_v0  ;;  %p474_p11 = por %p473_p10, %p472_p9 }
  0x1c   :  { %424 = vmatpush3.msra.mxu1 %v30_v2  ;;  %425 = vmatprep.mubr.msk.f32.mxu1 %vm521_vm0, %v520_v0 }
  0x1d   :  { %p475_p12 = pnand %p474_p11, %p468_p8 }
  0xed   :  { %v106_v5 = vpop.f32.mrb[0].mxu0  ;;  %v182_v6 = vpop.f32.mrb[0].mxu1 }
  0xee   :  { %v412_v7 = vpop.f32.mrb[1].mxu0  ;;  %v187_v8 = vsel %vm186_vm2, %v106_v5, -inf  ;;  %v417_v9 = vpop.f32.mrb[1].mxu1  ;;  %v190_v10 = vsel %vm186_vm2, %v182_v6, -inf }
  0xef   :  { %188 = vmax.xlane.f32.xlu0 %v187_v8 }
  0xf3   :  { %191 = vmax.xlane.f32.xlu0 %v190_v10 }
 0x17c   :  { %v189_v11 = vpop.xlane.xlu0 %188 }
 0x17d   :  { %v193_v12 = vsub.f32 %v106_v5, %v189_v11 }
 0x17f   :  { %v195_v13 = vmul.f32 1.442695, %v193_v12 }
 0x180   :  { %v192_v14 = vpop.xlane.xlu0 %191 }
 0x181   :  { %437 = vpow2.f32 %v195_v13  ;;  %v194_v15 = vsub.f32 %v182_v6, %v192_v14 }
 0x183   :  { %v197_v16 = vmul.f32 1.442695, %v194_v15 }
 0x185   :  { %439 = vpow2.f32 %v197_v16 }
 0x18b   :  { %v438_v17 = vpop.eup %437 }
 0x18c   :  { %v199_v18 = vsel %vm186_vm2, %v438_v17, 0.0 }
 0x18d   :  { %200 = vadd.xlane.f32.xlu1 %v199_v18 }
 0x18f   :  { %v440_v19 = vpop.eup %439 }
 0x190   :  { %v202_v20 = vsel %vm186_vm2, %v440_v19, 0.0 }
 0x191   :  { %203 = vadd.xlane.f32.xlu1 %v202_v20 }
 0x21a   :  { %v201_v21 = vpop.xlane.xlu1 %200 }
 0x21b   :  { %441 = vrcp.f32 %v201_v21 }
 0x21e   :  { %v204_v22 = vpop.xlane.xlu1 %203 }
 0x21f   :  { %443 = vrcp.f32 %v204_v22 }
 0x225   :  { %v442_v23 = vpop.eup %441 }
 0x226   :  { %v206_v24 = vmul.f32 %v442_v23, %v438_v17 }
 0x228   :  { %359 = vst.msk [vmem:[#allocation6] sm:$0x1] %vm186_vm2, %v206_v24  ;;  %421 = vmatmul.mubr.msk.f32.vlgmr.msra.gmra.mrb[2].mxu0 %vm209_vm3, %v206_v24 }
 0x229   :  { %v444_v25 = vpop.eup %443 }
 0x22a   :  { %v208_v26 = vmul.f32 %v444_v25, %v440_v19 }
 0x22c   :  { %360 = vst.msk [vmem:[#allocation6 + $0x1] sm:$0x1] %vm186_vm2, %v208_v26  ;;  %426 = vmatmul.mubr.msk.f32.vlgmr.msra.gmra.mrb[2].mxu1 %vm209_vm3, %v208_v26 }
 0x22d   :  { %478 = shalt.err (!%p475_p12)
}
 0x22e   :  { %s479_s6 = scalar_lea.hbm %s601_s3, 32 }
 0x22f   :  { %p480_p13 = scmp.ne.s32.totalorder %s601_s3, %s479_s6  ;;  %p483_p0 = scmp.lt.u32.totalorder %s479_s6, %s601_s3 }
 0x231   :  { %p485_p1 = pnand %p483_p0, %p480_p13 }
 0x233   :  { %488 = shalt.err (!%p485_p1)
}
 0x234   :  { %s523_s11 = smov 16   ;;  %s524_s12 = smov 1   ;;  %vm356_vm4 = vcmask 253952  }
 0x235   :  { %384 = dma.vmem_to_hbm [thread:$0]  %s379_s29, 32, %s601_s3, [#allocation7], %s523_s11, %s523_s11, %s524_s12  }
 0x236   :  { %s525_s15 = smov [#allocation5]  }
 0x237   :  { %s366_s16 = sshll.u32 %s525_s15, 4  ;;  %s367_s16 = int_to_ptr.vmem [resolvable:$true] %s366_s16 }
 0x238   :  { %s489_s17 = scalar_lea.vmem %s367_s16, 32  ;;  %p494_p3 = scmp.lt.s32.totalorder %s367_s16, %s367_s16 }
 0x239   :  { %p490_p2 = scmp.ne.s32.totalorder %s367_s16, %s489_s17  ;;  %p495_p4 = scmp.lt.s32.totalorder %s489_s17, %s489_s17 }
 0x23b   :  { %p496_p5 = por %p495_p4, %p494_p3 }
 0x23d   :  { %p497_p6 = pnand %p496_p5, %p490_p2 }
 0x2fb   :  { %v279_v27 = vpop.f32.mrb[2].mxu0 }
 0x2fc   :  { %357 = vst.msk [vmem:[#allocation5] sm:$0x1] %vm356_vm4, %v279_v27  ;;  %v422_v28 = vpop.f32.mrb[3].mxu0 }
 0x2ff   :  { %v352_v29 = vpop.f32.mrb[2].mxu1 }
 0x300   :  { %358 = vst.msk [vmem:[#allocation5 + $0x1] sm:$0x1] %vm356_vm4, %v352_v29  ;;  %v427_v30 = vpop.f32.mrb[3].mxu1 }
 0x301   :  { %500 = shalt.err (!%p497_p6)
}
 0x302   :  { %s501_s3 = scalar_lea.hbm %s600_s2, 32 }
 0x303   :  { %p502_p7 = scmp.ne.s32.totalorder %s600_s2, %s501_s3  ;;  %p505_p8 = scmp.lt.u32.totalorder %s501_s3, %s600_s2 }
 0x305   :  { %p507_p9 = pnand %p505_p8, %p502_p7 }
 0x307   :  { %510 = shalt.err (!%p507_p9)
}
 0x308   :  { %372 = dma.vmem_to_hbm [thread:$0]  %s367_s16, 32, %s600_s2, [#allocation4], %s523_s11, %s523_s11, %s524_s12  }
 0x309   :  { %513 = dma.done.wait [#allocation4], 32  }
 0x30a   :  { %514 = vsyncadd [#allocation4], 4294967264 }
 0x30b   :  { %515 = dma.done.wait [#allocation7], 32  }
 0x30c   :  { %516 = vsyncadd [#allocation7], 4294967264 }
 0x30d   :  { %391 = vsyncpa [#allocation3], 1 }
 0x30e   :  { %392 = vsyncpa [#allocation4], 1 }
 0x30f   :  { %393 = vsyncpa [#allocation7], 1 }

</bundles_post_ra>
